<compile_context>
chip_gen: v7x
topology: tpu7x:2x2x1
jax: 0.10.0
libtpu: 0.0.40
codegen_flags: <defaults>
</compile_context>

<pallas_src>
import jax
import jax.numpy as jnp
import numpy as np
from jax.experimental import pallas as pl
from jax.experimental.pallas import tpu as pltpu

TAU = 2.0
V_TH = 1.0
V_RESET = 0.0
DECAY = 1.0 - 1.0 / TAU          # leak factor on the membrane potential


def asl_kernel(patches_ref, w_ref, shift_ref, out_ref, v_ref):
    """One grid step = (one batch element, one spatial tile, one time step).

    Grid = (B, HW_tiles, T) with T innermost ("arbitrary") so the LIF membrane
    potential `v_ref` (VMEM scratch, [Cout, tile_hw] f32) is carried
    sequentially across time for a fixed (batch, spatial-tile).  Do not reorder
    the grid axes or the carry breaks.
    """
    t = pl.program_id(2)

    # Reset neuron state at the start of each time sequence.
    @pl.when(t == 0)
    def _():
        v_ref[...] = jnp.full_like(v_ref, V_RESET)

    # Conv(3x3) + bias + BN + 1/tau, all folded into (w_eff, shift_eff).
    # bf16 x bf16 -> f32 accumulate on the MXU; result is already lane-dense.
    drive = jnp.dot(w_ref[...], patches_ref[...],
                    preferred_element_type=jnp.float32)        # [Cout, tile_hw]
    v_new = DECAY * v_ref[...] + drive + shift_ref[...]        # shift: [Cout, 1]

    # LIF fire + hard reset (v_reset = 0).
    spike = v_new >= V_TH
    out_ref[...] = spike.astype(out_ref.dtype)
    v_ref[...] = jnp.where(spike, V_RESET, v_new)


def _pick_tile_hw(hw, max_tile=2048):
    """Largest multiple-of-128 divisor of H*W (lane-dense, unmasked stores),
    capped at max_tile; fall back to the full extent (always legal)."""
    if hw % 128 != 0:
        return hw
    divisors = [d for d in range(128, min(hw, max_tile) + 1, 128) if hw % d == 0]
    return max(divisors) if divisors else hw


def aggregated_spiking_layer(x, w, b, gamma, beta, running_mean, running_var,
                             eps=1e-5, tile_hw=None):
    """x: [T, B, Cin, H, W] float32 -> spikes [T, B, Cout, H, W] float32."""
    T, B, Cin, H, W = x.shape
    Cout = w.shape[0]
    K = 9 * Cin
    HW = H * W

    # ---- glue: im2col (3x3, pad=1, stride=1) in NCHW, channel-major, bf16 ----
    x_bf = x.astype(jnp.bfloat16)
    xp = jnp.pad(x_bf, ((0, 0), (0, 0), (0, 0), (1, 1), (1, 1)))
    cols = [xp[:, :, :, ky:ky + H, kx:kx + W]
            for ky in range(3) for kx in range(3)]
    patches = jnp.concatenate(cols, axis=2)              # [T, B, 9*Cin, H, W]
    patches = patches.reshape(T, B, K, HW)               # lane axis = H*W

    # Weight [Cout, Cin, 3, 3] -> [Cout, 9*Cin] matching the patch ordering
    # (k = (ky*3 + kx)*Cin + cin).
    w_ck = jnp.transpose(w, (0, 2, 3, 1)).reshape(Cout, K).astype(jnp.float32)

    # Fold conv bias + BN running stats + 1/tau into (w_eff, shift_eff):
    #   h_bn  = bn_scale * (conv + b) + bn_shift
    #   v_new = (1 - 1/tau) * v + h_bn / tau
    inv_std = 1.0 / jnp.sqrt(running_var.astype(jnp.float32) + eps)
    bn_scale = gamma.astype(jnp.float32) * inv_std
    bn_shift = beta.astype(jnp.float32) - running_mean.astype(jnp.float32) * bn_scale
    w_eff = (w_ck * (bn_scale / TAU)[:, None]).astype(jnp.bfloat16)       # [Cout, K]
    shift_eff = ((bn_scale * b.astype(jnp.float32) + bn_shift) / TAU)
    shift_eff = shift_eff.reshape(Cout, 1).astype(jnp.float32)            # [Cout, 1]

    if tile_hw is None:
        tile_hw = _pick_tile_hw(HW)
    assert HW % tile_hw == 0, "H*W must be divisible by tile_hw"
    grid = (B, HW // tile_hw, T)

    out = pl.pallas_call(
        asl_kernel,
        out_shape=jax.ShapeDtypeStruct((T, B, Cout, HW), jnp.bfloat16),
        grid_spec=pltpu.PrefetchScalarGridSpec(
            num_scalar_prefetch=0,
            grid=grid,
            in_specs=[
                pl.BlockSpec((None, None, K, tile_hw),
                             lambda bb, r, t: (t, bb, 0, r)),             # patches
                pl.BlockSpec((Cout, K), lambda bb, r, t: (0, 0)),         # folded weight
                pl.BlockSpec((Cout, 1), lambda bb, r, t: (0, 0)),         # folded shift
            ],
            out_specs=pl.BlockSpec((None, None, Cout, tile_hw),
                                   lambda bb, r, t: (t, bb, 0, r)),
            scratch_shapes=[pltpu.VMEM((Cout, tile_hw), jnp.float32)],    # membrane v
        ),
        compiler_params=pltpu.CompilerParams(
            dimension_semantics=("parallel", "parallel", "arbitrary")),
    )(patches, w_eff, shift_eff)

    out = out.reshape(T, B, Cout, H, W)                  # no transpose needed
    return out.astype(jnp.float32)                       # keep PyTorch's f32 contract


if __name__ == "__main__":
    # Small shapes consistent with the module's [t, b, c, h, w] convention.
    T, B, Cin, Cout, H, W = 4, 2, 4, 8, 16, 16

    key = jax.random.PRNGKey(0)
    kx, kw, kb, kg, kbe, km, kv = jax.random.split(key, 7)

    x = jax.random.normal(kx, (T, B, Cin, H, W), dtype=jnp.float32)

    # Deterministic synthetic parameters (shapes from Conv2d / BatchNorm2d __init__).
    w = 0.2 * jax.random.normal(kw, (Cout, Cin, 3, 3), dtype=jnp.float32)
    b = 0.1 * jax.random.normal(kb, (Cout,), dtype=jnp.float32)
    gamma = 1.0 + 0.1 * jax.random.normal(kg, (Cout,), dtype=jnp.float32)
    beta = 0.1 * jax.random.normal(kbe, (Cout,), dtype=jnp.float32)
    running_mean = 0.1 * jax.random.normal(km, (Cout,), dtype=jnp.float32)
    running_var = jnp.abs(jax.random.normal(kv, (Cout,), dtype=jnp.float32)) + 0.5

    spikes = aggregated_spiking_layer(x, w, b, gamma, beta, running_mean, running_var)
    spikes = jax.block_until_ready(spikes)

    assert spikes.shape == (T, B, Cout, H, W), spikes.shape
    assert spikes.dtype == jnp.float32
    sp = np.asarray(spikes)
    assert np.isfinite(sp).all()
    # Spiking output must be binary (Heaviside surrogate forward).
    assert np.all((sp == 0.0) | (sp == 1.0))

    print("KERNEL_OK")
</pallas_src>

<mosaic_0001>
module attributes {stable_mosaic.version = 11 : i64} {
  func.func @asl_kernel(%arg0: i32, %arg1: i32, %arg2: i32, %arg3: memref<1x1x36x256xbf16, #tpu.memory_space<vmem>>, %arg4: memref<8x36xbf16, #tpu.memory_space<vmem>>, %arg5: memref<8x1xf32, #tpu.memory_space<vmem>>, %arg6: memref<1x1x8x256xbf16, #tpu.memory_space<vmem>>, %arg7: memref<8x256xf32, #tpu.memory_space<vmem>>) attributes {dimension_semantics = [#tpu.dimension_semantics<parallel>, #tpu.dimension_semantics<parallel>, #tpu.dimension_semantics<arbitrary>], iteration_bounds = array<i64: 2, 1, 4>, scalar_prefetch = 0 : i64, scratch_operands = 1 : i64, tpu.core_type = #tpu.core_type<tc>, window_params = [{transform_indices = @transform_0, window_bounds = array<i64: 1, 1, 36, 256>}, {pipeline_mode = #tpu.pipeline_mode<synchronous>, transform_indices = @transform_1, window_bounds = array<i64: 8, 36>}, {pipeline_mode = #tpu.pipeline_mode<synchronous>, transform_indices = @transform_2, window_bounds = array<i64: 8, 1>}, {transform_indices = @transform_3, window_bounds = array<i64: 1, 1, 8, 256>}]} {
    %c0_i32 = arith.constant 0 : i32
    %0 = arith.cmpi eq, %arg2, %c0_i32 : i32
    %1 = arith.extui %0 : i1 to i32
    %c0_i32_0 = arith.constant 0 : i32
    %2 = arith.cmpi ne, %1, %c0_i32_0 : i32
    scf.if %2 {
      %cst_19 = arith.constant 0.000000e+00 : f32
      %25 = vector.broadcast %cst_19 : f32 to vector<8x256xf32>
      %c0_20 = arith.constant 0 : index
      %c0_21 = arith.constant 0 : index
      %26 = vector.load %arg7[%c0_20, %c0_21] : memref<8x256xf32, #tpu.memory_space<vmem>>, vector<8x256xf32>
      tpu.vector_store %arg7[%c0_20, %c0_21], %25 {strides = array<i32>} : memref<8x256xf32, #tpu.memory_space<vmem>>, vector<8x256xf32>,
    } else {
    }
    %c0 = arith.constant 0 : index
    %c0_1 = arith.constant 0 : index
    %3 = vector.load %arg4[%c0, %c0_1] : memref<8x36xbf16, #tpu.memory_space<vmem>>, vector<8x36xbf16>
    %c0_2 = arith.constant 0 : index
    %c0_3 = arith.constant 0 : index
    %c0_4 = arith.constant 0 : index
    %c0_5 = arith.constant 0 : index
    %4 = vector.load %arg3[%c0_2, %c0_3, %c0_4, %c0_5] : memref<1x1x36x256xbf16, #tpu.memory_space<vmem>>, vector<1x1x36x256xbf16>
    %5 = vector.shape_cast %4 : vector<1x1x36x256xbf16> to vector<36x256xbf16>
    %cst = arith.constant dense<0.000000e+00> : vector<8x256xf32>
    %6 = tpu.matmul %3, %5, %cst {dimension_numbers = #tpu.dot_dimension_numbers<[1], [0], [0], [1], [0, 0, 1, 1], [], []>} : vector<8x36xbf16>, vector<36x256xbf16>, vector<8x256xf32> -> vector<8x256xf32>
    %c0_6 = arith.constant 0 : index
    %c0_7 = arith.constant 0 : index
    %7 = vector.load %arg7[%c0_6, %c0_7] : memref<8x256xf32, #tpu.memory_space<vmem>>, vector<8x256xf32>
    %cst_8 = arith.constant 5.000000e-01 : f32
    %8 = vector.broadcast %cst_8 : f32 to vector<8x256xf32>
    %9 = arith.mulf %8, %7 : vector<8x256xf32>
    %10 = arith.addf %9, %6 : vector<8x256xf32>
    %c0_9 = arith.constant 0 : index
    %c0_10 = arith.constant 0 : index
    %11 = vector.load %arg5[%c0_9, %c0_10] : memref<8x1xf32, #tpu.memory_space<vmem>>, vector<8x1xf32>
    %12 = vector.broadcast %11 : vector<8x1xf32> to vector<8x256xf32>
    %13 = arith.addf %10, %12 : vector<8x256xf32>
    %cst_11 = arith.constant 1.000000e+00 : f32
    %14 = vector.broadcast %cst_11 : f32 to vector<8x256xf32>
    %15 = arith.cmpf oge, %13, %14 : vector<8x256xf32>
    %16 = arith.extui %15 : vector<8x256xi1> to vector<8x256xi32>
    %17 = arith.sitofp %16 : vector<8x256xi32> to vector<8x256xf32>
    %18 = arith.truncf %17 : vector<8x256xf32> to vector<8x256xbf16>
    %c0_12 = arith.constant 0 : index
    %c0_13 = arith.constant 0 : index
    %c0_14 = arith.constant 0 : index
    %c0_15 = arith.constant 0 : index
    %19 = vector.load %arg6[%c0_12, %c0_13, %c0_14, %c0_15] : memref<1x1x8x256xbf16, #tpu.memory_space<vmem>>, vector<1x1x8x256xbf16>
    %20 = vector.shape_cast %19 : vector<1x1x8x256xbf16> to vector<8x256xbf16>
    %21 = vector.shape_cast %18 : vector<8x256xbf16> to vector<1x1x8x256xbf16>
    tpu.vector_store %arg6[%c0_12, %c0_13, %c0_14, %c0_15], %21 {strides = array<i32>} : memref<1x1x8x256xbf16, #tpu.memory_space<vmem>>, vector<1x1x8x256xbf16>,
    %cst_16 = arith.constant 0.000000e+00 : f32
    %22 = vector.broadcast %cst_16 : f32 to vector<8x256xf32>
    %23 = arith.select %15, %22, %13 : vector<8x256xi1>, vector<8x256xf32>
    %c0_17 = arith.constant 0 : index
    %c0_18 = arith.constant 0 : index
    %24 = vector.load %arg7[%c0_17, %c0_18] : memref<8x256xf32, #tpu.memory_space<vmem>>, vector<8x256xf32>
    tpu.vector_store %arg7[%c0_17, %c0_18], %23 {strides = array<i32>} : memref<8x256xf32, #tpu.memory_space<vmem>>, vector<8x256xf32>,
    return
  }
  func.func @transform_0(%arg0: i32, %arg1: i32, %arg2: i32) -> (i32, i32, i32, i32) {
    %c0_i32 = arith.constant 0 : i32
    %c0_i32_0 = arith.constant 0 : i32
    return %arg2, %arg0, %c0_i32, %arg1 : i32, i32, i32, i32
  }
  func.func @transform_1(%arg0: i32, %arg1: i32, %arg2: i32) -> (i32, i32) {
    %c0_i32 = arith.constant 0 : i32
    %c0_i32_0 = arith.constant 0 : i32
    %c0_i32_1 = arith.constant 0 : i32
    return %c0_i32, %c0_i32_0 : i32, i32
  }
  func.func @transform_2(%arg0: i32, %arg1: i32, %arg2: i32) -> (i32, i32) {
    %c0_i32 = arith.constant 0 : i32
    %c0_i32_0 = arith.constant 0 : i32
    %c0_i32_1 = arith.constant 0 : i32
    return %c0_i32, %c0_i32_0 : i32, i32
  }
  func.func @transform_3(%arg0: i32, %arg1: i32, %arg2: i32) -> (i32, i32, i32, i32) {
    %c0_i32 = arith.constant 0 : i32
    %c0_i32_0 = arith.constant 0 : i32
    return %arg2, %arg0, %c0_i32, %arg1 : i32, i32, i32, i32
  }
}

</mosaic_0001>

<bundles_post_ra>
// kernel: tpu_custom_call.1
= control target key start
LH: loop header
LB: loop body
LE: loop exit
PB: predicated region body
PF: predicated region fallthrough
CT: control target
= control target key end

     0   :  { %8 = vsyncpa [#allocation4], 0  ;;  %s841_s0 = inlined_call_operand.vmem [shape: bf16[4,2,36,256], index: 0, kind: input, shape index: {}]   ;;  %s842_s1 = inlined_call_operand.vmem [shape: bf16[8,36], index: 1, kind: input, shape index: {}]   ;;  %s843_s2 = inlined_call_operand.vmem [shape: f32[8,1], index: 2, kind: input, shape index: {}]   ;;  %s844_s3 = inlined_call_operand.hbm [shape: bf16[4,2,8,256], index: 3, kind: output, shape index: {}]  }
   0x1   :  { %10 = vsyncpa [#allocation4 + $0x1], 0  ;;  %s686_s12 = smov 0   ;;  %s688_s13 = smov 0  }
   0x2   :  { %s690_s14 = smov 0   ;;  %s692_s15 = smov 0  }
   0x3   :  { %s694_s16 = smov 0   ;;  %s696_s17 = smov 0  }
   0x4   :  { %s698_s18 = smov 0   ;;  %s700_s19 = smov 0  }
   0x5 LB: > { %s455_s20 = sadd.s32 4294967295, %s660_s19   ;;  %s456_s21 = sadd.s32 4294967294, %s660_s19   ;;  %s660_s19 = sphi %s700_s19, %s16_s19   ;;  %s656_s18 = sphi %s698_s18, %s853_s18   ;;  %s652_s17 = sphi %s696_s17, %s852_s17   ;;  %s648_s16 = sphi %s694_s16, %s851_s16   ;;  %s644_s15 = sphi %s692_s15, %s850_s15   ;;  %s640_s14 = sphi %s690_s14, %s849_s14   ;;  %s636_s13 = sphi %s688_s13, %s848_s13   ;;  %s632_s12 = sphi %s686_s12, %s847_s12  }
   0x6   : > { %s28_s22 = sadd.s32 1, %s652_s17  ;;  %s35_s23 = sadd.s32 1, %s656_s18 }
   0x7   : > { %p29_p0 = scmp.ge.s32.totalorder %s28_s22, 4  ;;  %p128_p1 = scmp.ne.s32.totalorder %s640_s14, %s636_s13 }
   0x8   : > { %p129_p2 = scmp.eq.s32.totalorder %s455_s20, 7  ;;  %p134_p5 = scmp.ne.s32.totalorder %s636_s13, %s632_s12 }
   0x9   : > { %s855_s22 = smov (%p29_p0, %s28_s22), 0  ;;  %s857_s23 = smov (!%p29_p0, %s35_s23), %s656_s18 }
   0xa   : > { %s111_s24 = ssub.s32 %s652_s17, %s855_s22  ;;  %p737_p3 = por %p129_p2, %p128_p1 }
   0xb   : > { %p37_p4 = scmp.ge.s32.totalorder %s857_s23, 2  ;;  %p135_p6 = scmp.eq.s32.totalorder %s456_s21, 7 }
   0xc   : > { %p459_p7 = scmp.ge.s32.totalorder %s660_s19, 1  ;;  %p176_p9 = scmp.lt.s32.totalorder %s660_s19, 9 }
   0xd   : > { %s859_s23 = smov (%p37_p4, %s857_s23), 0  ;;  %p746_p8 = por %p135_p6, %p134_p5 }
   0xe   : > { %s112_s27 = ssub.s32 %s656_s18, %s859_s23  ;;  %s118_s28 = sadd.s32 1, %s640_s14 }
   0xf   : > { %s113_s29 = sor.u32 %s112_s27, %s111_s24  ;;  %p177_p10 = pnand %p459_p7, %p176_p9 }
  0x10   : > { %p116_p11 = scmp.eq.s32.totalorder %s113_s29, 0  ;;  %s205_s4 = sand.u32 (!%p177_p10), 1, %s636_s13  }
  0x11   : > { %180 = sbr.rel (%p177_p10) target bundleno = 284 (0x11c), region = 32  ;;  %p209_p12 = scmp.lt.s32.totalorder (!%p177_p10), %s644_s15, 3 }
  0x12   : > { %s755_s30 = scalar_select %p116_p11, %s640_s14, %s118_s28  }
  0x13   : > { %s761_s5 = sshll.u32 (!%p177_p10), %s205_s4, 3  ;;  %p211_p13 = scmp.lt.s32.totalorder (!%p177_p10), %s648_s16, 1 }
  0x14   : > { %s207_s27 = scalar_lea.vmem (!%p177_p10), [#allocation3], %s761_s5  ;;  %p462_p0 = scmp.ne.s32.totalorder (!%p177_p10), %s644_s15, 0 }
  0x18   : > { %s210_s6 = scalar_select %p209_p12, %s644_s15, 3 }
  0x19   : > { %s212_s7 = scalar_select %p211_p13, %s648_s16, 1 }
  0x1a   : > { %s482_s8 = smul.u32 20, %s210_s6  ;;  %v662_v0 = vmov (!%p462_p0), 0.0  }
  0x1b   : > { %s481_s9 = smul.u32 10, %s212_s7  ;;  %228 = vst [vmem:[#allocation2] sm:$0xff] (!%p462_p0), %v662_v0  ;;  %229 = vst [vmem:[#allocation2 + $0x8] sm:$0xff] (!%p462_p0), %v662_v0 }
  0x1c   : > { %227 = sbr.rel (%p462_p0) target bundleno = 35 (0x23), region = 36 }
  0x1d   : > { %s218_s10 = sadd.s32 %s482_s8, %s481_s9 }
  0x1e   : > { %s461_s11 = sshll.u32 %s218_s10, 2 }
  0x1f   : > { %s220_s24 = scalar_lea.vmem %s841_s0, %s461_s11 }
  0x23 PF: > { %v558_v1 = vld [vmem:[%s220_s24 + $0x4] ss:$8 sps:$4 sm:$0xff]   ;;  %v560_v2 = vld [vmem:[%s220_s24] ss:$8 sps:$4 sm:$0xff]   ;;  %v663_v3 = vmov 0   ;;  %vm265_vm0 = vcmask 1041408  }
  0x24   : > { %304 = vmatprep.mubr.bf16.mxu0 %v663_v3  ;;  %557 = vset.pattern.permute.xlu0 %v663_v3  ;;  %v561_v4 = vld [vmem:[%s220_s24 + $0x14] ss:$8 sps:$4 sm:$0xff]   ;;  %v235_v5 = vld [vmem:[%s220_s24 + $0x20] sm:$0x33]  ;;  %v563_v6 = vld [vmem:[%s220_s24 + $0x10] ss:$8 sps:$4 sm:$0xff]  }
  0x25   : > { %272 = vmatprep.subr.bf16.mxu0 %v558_v1  ;;  %v319_v7 = vld [vmem:[%s843_s2] sm:$0xff]  ;;  %v468_v8 = vcombine.high %v235_v5, %v235_v5  ;;  %v467_v9 = vcombine.low %v235_v5, %v235_v5  ;;  %vm261_vm1 = vcmask 293888   ;;  %v314_v13 = vld [vmem:[#allocation2 + $0x8] sm:$0xff]  ;;  %s475_s8 = sshll.u32 %s648_s16, 1  ;;  %s476_s9 = sshll.u32 %s644_s15, 2  ;;  %v664_v25 = vmov 0.0  }
  0x26   : > { %273 = vmatpush1.bf16.msra.mxu0 %v560_v2  ;;  %322 = vperm.xlu0 %557, %v319_v7   ;;  %v230_v11 = vld [vmem:[%s842_s1] sm:$0xf]  ;;  %v316_v15 = vmul.f32 0.5, %v314_v13  ;;  %s361_s10 = sadd.s32 %s476_s9, %s475_s8  ;;  %s365_s20 = sshll.u32 %s207_s27, 4  ;;  %s786_s20 = int_to_ptr.vmem [resolvable:$true] %s365_s20 }
  0x27   : > { %274 = vmatprep.subr.bf16.mxu0 %v561_v4  ;;  %v267_v10 = vsel %vm265_vm0, %v467_v9, 0  ;;  %v313_v12 = vld [vmem:[#allocation2] sm:$0xff]  ;;  %s477_s11 = sshll.u32 %s361_s10, 6  ;;  %s347_s24 = scalar_lea.sflag [#allocation4], %s205_s4 }
  0x28   : > { %v315_v14 = vmul.f32 0.5, %v313_v12  ;;  %s784_s21 = scalar_lea.hbm %s844_s3, %s477_s11  ;;  %s566_s28 = scalar_lea.vmem %s786_s20, 128 }
  0x29   : > { %p567_p1 = scmp.ne.s32.totalorder %s786_s20, %s566_s28  ;;  %s665_s29 = smov [#allocation3]  }
  0x2a   : > { %275 = vmatpush1.bf16.msra.mxu0 %v563_v6  ;;  %s570_s6 = sshll.u32 %s665_s29, 4  ;;  %s571_s6 = int_to_ptr.vmem [resolvable:$false] %s570_s6 }
  0x2b   : > { %469 = vmatprep.subr.msk.bf16.mxu0 %vm265_vm0, %v468_v8  ;;  %p568_p2 = pnand %p567_p1, %p737_p3  ;;  %s572_s7 = scalar_lea.vmem %s571_s6, 256 }
  0x2c   : > { %p573_p5 = scmp.lt.s32.totalorder %s786_s20, %s571_s6  ;;  %p574_p6 = scmp.lt.s32.totalorder %s572_s7, %s566_s28 }
  0x2d   : > { %p569_p4 = pneg %p568_p2 }
  0x2e   : > { %277 = vmatpush1.bf16.msra.mxu0 %v267_v10  ;;  %p575_p7 = por %p574_p6, %p573_p5 }
  0x30   : > { %p576_p9 = pnand %p575_p7, %p569_p4 }
  0x31   : > { %470 = vmatmul.mubr.msk.bf16.vlgmr.msra.gmra.mrb[0].mxu0 %vm261_vm1, %v230_v11 }
  0xa5   : > { %v323_v17 = vpop.permute.xlu0 %322 }
 0x104   : > { %v306_v16 = vpop.f32.mrb[0].mxu0 }
 0x105   : > { %v317_v18 = vadd.f32 %v315_v14, %v306_v16  ;;  %v308_v19 = vpop.f32.mrb[1].mxu0 }
 0x106   : > { %v318_v20 = vadd.f32 %v316_v15, %v308_v19  ;;  %v310_v21 = vpop.f32.mrb[2].mxu0 }
 0x107   : > { %v325_v22 = vadd.f32 %v323_v17, %v317_v18  ;;  %v311_v23 = vpop.f32.mrb[3].mxu0 }
 0x108   : > { %v326_v24 = vadd.f32 %v323_v17, %v318_v20 }
 0x109   : > { %vm327_vm2 = vcmp.ge.f32.partialorder %v325_v22, 1.0 }
 0x10a   : > { %vm328_vm3 = vcmp.ge.f32.partialorder %v326_v24, 1.0  ;;  %v471_v26 = vsel %vm327_vm2, 1.0, %v664_v25  ;;  %v342_v27 = vsel %vm327_vm2, 0.0, %v325_v22 }
 0x10b   : > { %v472_v28 = vsel %vm328_vm3, 1.0, %v664_v25  ;;  %v343_v29 = vsel %vm328_vm3, 0.0, %v326_v24  ;;  %344 = vst [vmem:[#allocation2] sm:$0xff] %v342_v27 }
 0x10c   : > { %345 = vst [vmem:[#allocation2 + $0x8] sm:$0xff] %v343_v29  ;;  %v480_v30 = vpack.c.bf16 %v472_v28, %v471_v26 }
 0x10e   : > { %341 = vst [vmem:[%s207_s27] sm:$0xff] %v480_v30 }
 0x10f   : > { %579 = shalt.err (!%p576_p9)
}
 0x110   : > { %s580_s4 = scalar_lea.hbm %s784_s21, 128  ;;  %s584_s8 = scalar_lea.hbm %s844_s3, 1024 }
 0x111   : > { %p581_p10 = scmp.ne.s32.totalorder %s784_s21, %s580_s4  ;;  %p585_p13 = scmp.lt.u32.totalorder %s784_s21, %s844_s3 }
 0x112   : > { %p586_p0 = scmp.lt.u32.totalorder %s584_s8, %s580_s4  ;;  %p588_p2 = scmp.lt.u32.totalorder %s580_s4, %s784_s21 }
 0x113   : > { %p582_p11 = pnand %p581_p10, %p737_p3 }
 0x114   : > { %p587_p1 = por %p586_p0, %p585_p13 }
 0x115   : > { %p583_p12 = pneg %p582_p11 }
 0x116   : > { %p589_p4 = por %p588_p2, %p587_p1 }
 0x118   : > { %p590_p5 = pnand %p589_p4, %p583_p12 }
 0x11a   : > { %593 = shalt.err (!%p590_p5)
}
 0x11b   : > { %483 = dma.vmem_to_hbm [thread:$0]  (%p737_p3), %s786_s20, 128, %s784_s21, %s347_s24  }
 0x11c PF: > { %p489_p6 = scmp.ge.s32.totalorder %s660_s19, 2  ;;  %s377_s11 = sand.u32 1, %s632_s12  }
 0x11d   : > { %s378_s15 = scalar_lea.sflag [#allocation4], %s377_s11 }
 0x11e   : > { %p486_p7 = pnand %p489_p6, %p746_p8 }
 0x120   : > { %627 = dma.done.wait (!%p486_p7), %s378_s15, 128  }
 0x121   : > { %629 = vsyncadd (!%p486_p7), %s378_s15, 4294967168  ;;  %s16_s19 = sadd.s32 1, %s660_s19   ;;  %s847_s12 = smov %s636_s13 }
 0x122   : > { %p13_p9 = scmp.ge.s32.totalorder %s16_s19, 10   ;;  %s848_s13 = smov %s640_s14 }
 0x123   : > { %s849_s14 = smov %s755_s30  ;;  %s850_s15 = smov %s652_s17 }
 0x124   : > { %s851_s16 = smov %s656_s18  ;;  %s852_s17 = smov %s855_s22 }
 0x125   : > { %s853_s18 = smov %s859_s23  ;;  %15 = sbr.rel (!%p13_p9) target bundleno = 5 (0x5), region = 71 }
 0x12c   :  { %383 = vsyncpa [#allocation4], 1 }
 0x12d   :  { %385 = vsyncpa [#allocation4 + $0x1], 1 }

</bundles_post_ra>
